<compile_context>
chip_gen: v5e
topology: v5e:2x2
jax: 0.10.0
libtpu: 0.0.40
codegen_flags: <defaults>
</compile_context>

<pallas_src>
import jax
import jax.numpy as jnp
from jax.experimental import pallas as pl
from jax.experimental.pallas import tpu as pltpu


# ----------------------------------------------------------------------------
# Kernels
# ----------------------------------------------------------------------------

def _resident_kernel(idx_ref, feat_ref, out_ref):
    # idx_ref : (1, 1, TNV)   int32 flat spatial vertex index, -1 if OOB/pad
    # feat_ref: (1, C, S3p)   whole feature volume, VMEM-resident across NV tiles
    # out_ref : (1, C, TNV)   sampled features (lane-dense on N*V)
    feat = feat_ref[0]                                   # (C, S3p)
    idx = idx_ref[0]                                     # (1, TNV)
    s3 = feat.shape[1]
    tnv = idx.shape[1]

    row_ids = jax.lax.broadcasted_iota(jnp.int32, (s3, tnv), 0)
    onehot = (row_ids == idx).astype(feat.dtype)         # -1 never matches -> 0 row

    out_ref[0] = jnp.dot(feat, onehot,
                         preferred_element_type=jnp.float32).astype(out_ref.dtype)


def _chunked_kernel(idx_ref, feat_ref, out_ref, acc_ref):
    # idx_ref : (1, 1, TNV)  int32 flat spatial vertex index, -1 if OOB/pad
    # feat_ref: (1, C, TS3)  feature chunk (channels on sublanes, spatial on lanes)
    # out_ref : (1, C, TNV)  sampled features (lane-dense on N*V)
    # acc_ref : (C, TNV) f32 accumulator across the S^3 reduction grid axis
    k = pl.program_id(2)

    @pl.when(k == 0)
    def _():
        acc_ref[...] = jnp.zeros_like(acc_ref)

    feat = feat_ref[0]                                   # (C, TS3)
    idx = idx_ref[0]                                     # (1, TNV)
    ts3 = feat.shape[1]
    tnv = idx.shape[1]

    # Shift the (small) idx row into chunk-local coordinates instead of adding
    # the chunk offset to the big iota: OOB (-1) or out-of-chunk never matches.
    rel = idx - k * ts3                                  # (1, TNV)
    row_ids = jax.lax.broadcasted_iota(jnp.int32, (ts3, tnv), 0)
    onehot = (row_ids == rel).astype(feat.dtype)         # (TS3, TNV)

    acc_ref[...] += jnp.dot(feat, onehot, preferred_element_type=jnp.float32)

    @pl.when(k == pl.num_programs(2) - 1)
    def _():
        out_ref[0] = acc_ref[...].astype(out_ref.dtype)


# ----------------------------------------------------------------------------
# Pure-JAX glue
# ----------------------------------------------------------------------------

def _vertex_indices(ptcloud, scale, neighborhood_size):
    """Per-point flat vertex indices (B, N, V), -1 if out of bounds."""
    B, N, _ = ptcloud.shape
    h = scale / 2.0
    pt = ptcloud * h + h                                 # grid coords in [0, S]
    lower = jnp.floor(pt).astype(jnp.int32)              # (B, N, 3)
    ns = neighborhood_size - 1
    nbs = 2 * neighborhood_size
    offs = jnp.arange(nbs, dtype=jnp.int32) - ns         # lower-ns .. lower+1+ns

    jx = lower[..., 0][..., None] + offs                 # (B, N, nbs)
    ky = lower[..., 1][..., None] + offs
    mz = lower[..., 2][..., None] + offs

    J = jx[:, :, :, None, None]                          # x is outermost loop
    K = ky[:, :, None, :, None]
    M = mz[:, :, None, None, :]                          # z is innermost loop
    valid = ((J >= 0) & (J < scale) &
             (K >= 0) & (K < scale) &
             (M >= 0) & (M < scale))
    flat = J * scale * scale + K * scale + M
    idx = jnp.where(valid, flat, -1)
    return idx.reshape(B, N, nbs ** 3).astype(jnp.int32)


def _round_up(x, m):
    return ((x + m - 1) // m) * m


def _largest_aligned_divisor(total, cap):
    """Largest multiple of 128 dividing `total` (itself a multiple of 128), <= cap."""
    t = max(128, min(total, (cap // 128) * 128))
    while t >= 128:
        if total % t == 0:
            return t
        t -= 128
    return 128


def _vmem_capacity_bytes():
    """Device VMEM capacity (v5e/v6e: 128 MiB, v7x: 64 MiB), conservative fallback."""
    try:
        info = pltpu.get_tpu_info()
        for name in ("vmem_capacity_bytes", "vmem_size_bytes", "vmem_bytes"):
            cap = getattr(info, name, None)
            if cap:
                return int(cap)
    except Exception:
        pass
    return 64 * 1024 * 1024        # v7x-safe default


def _resident_vmem(C, S3p, tnv, it):
    # double-buffered feat/idx/out blocks + iota(int32)+onehot(f32) intermediates
    # + f32 matmul result before cast.
    return (2 * C * S3p * it + 2 * tnv * 4 + 2 * C * tnv * it
            + 8 * S3p * tnv + C * tnv * 4)


def _chunked_vmem(C, ts3, tnv, it):
    # double-buffered blocks + f32 accumulator scratch + iota/onehot intermediates
    # + f32 matmul result.
    return (2 * tnv * 4 + 2 * C * ts3 * it + 2 * C * tnv * it
            + C * tnv * 4 + 8 * ts3 * tnv + C * tnv * 4)


# ----------------------------------------------------------------------------
# Public entry point
# ----------------------------------------------------------------------------

def cubic_feature_sampling(ptcloud, cubic_features, neighborhood_size=1,
                           tile_nv=None, tile_s3=None, force_path="auto"):
    """Forward pass of CubicFeatureSampling_function.

    ptcloud:        (B, N, 3) float32, coords in [-1, 1]
    cubic_features: (B, C, S, S, S) float32
    returns:        (B, N, V, C) with V = (2*neighborhood_size)^3
    """
    B, N, _ = ptcloud.shape
    Bc, C, S, _, _ = cubic_features.shape
    assert B == Bc
    V = (2 * neighborhood_size) ** 3
    NV = N * V
    S3 = S * S * S
    dtype = cubic_features.dtype
    itemsize = jnp.dtype(dtype).itemsize

    # ---- indices, padded to lane-aligned NV (pad idx = -1 -> contributes zeros) ----
    NVp = _round_up(NV, 128)
    idx = _vertex_indices(ptcloud, S, neighborhood_size).reshape(B, NV)
    if NVp != NV:
        idx = jnp.pad(idx, ((0, 0), (0, NVp - NV)), constant_values=-1)
    idx = idx.reshape(B, 1, NVp)

    # ---- feature volume, flattened (free reshape, no HBM transpose); lane-pad
    #      the spatial axis only if S^3 is not already a multiple of 128. ----
    S3p = _round_up(S3, 128)
    feat_flat = cubic_features.reshape(B, C, S3)
    if S3p != S3:
        feat_flat = jnp.pad(feat_flat, ((0, 0), (0, 0), (0, S3p - S3)))

    # ---- device-aware VMEM budget (~96 MiB on 128 MiB chips, ~38 MiB on v7x) ----
    vmem_cap = _vmem_capacity_bytes()
    if vmem_cap <= 80 * 1024 * 1024:
        budget = int(0.60 * vmem_cap)
    else:
        budget = int(0.75 * vmem_cap)

    # ---- tile defaults: small C => onehot (VPU) dominates, favor bigger tnv ----
    small_c = C <= 64
    target_tnv = tile_nv if tile_nv is not None else (1024 if small_c else 512)
    target_ts3 = tile_s3 if tile_s3 is not None else (1024 if small_c else 2048)

    use_resident = (force_path == "resident" or
                    (force_path == "auto" and
                     _resident_vmem(C, S3p, 128, itemsize) <= budget))

    if use_resident:
        # -------------------- resident-feature fast path --------------------
        tnv = _largest_aligned_divisor(NVp, target_tnv)
        while tnv > 128 and _resident_vmem(C, S3p, tnv, itemsize) > budget:
            tnv = _largest_aligned_divisor(NVp, tnv - 128)
        # megacore guard: keep >= 2 parallel blocks total when possible (v7x = 2 TCs)
        while B * (NVp // tnv) < 2 and tnv > 128:
            tnv = _largest_aligned_divisor(NVp, tnv - 128)

        vmem_need = _resident_vmem(C, S3p, tnv, itemsize)
        vmem_limit = int(max(min(budget, 2 * vmem_need), vmem_need, 16 * 1024 * 1024))
        vmem_limit = min(vmem_limit, int(0.9 * vmem_cap))

        cost = pl.CostEstimate(
            flops=2 * B * C * NVp * S3p,
            transcendentals=0,
            bytes_accessed=int(idx.size * 4
                               + B * C * S3p * itemsize        # feat read once / batch
                               + B * C * NVp * itemsize),
        )

        out_cnv = pl.pallas_call(
            _resident_kernel,
            out_shape=jax.ShapeDtypeStruct((B, C, NVp), dtype),
            grid=(B, NVp // tnv),
            in_specs=[
                pl.BlockSpec((1, 1, tnv), lambda b, n: (b, 0, n)),
                # constant block index across the NV axis -> feature volume stays
                # resident in VMEM (DMA'd once per batch, not once per tile).
                pl.BlockSpec((1, C, S3p), lambda b, n: (b, 0, 0)),
            ],
            out_specs=pl.BlockSpec((1, C, tnv), lambda b, n: (b, 0, n)),
            compiler_params=pltpu.CompilerParams(
                dimension_semantics=("parallel", "parallel"),
                vmem_limit_bytes=vmem_limit,
            ),
            cost_estimate=cost,
        )(idx, feat_flat)
    else:
        # ------------------ chunked S^3-reduction fallback -------------------
        ts3 = _largest_aligned_divisor(S3p, target_ts3)
        tnv = _largest_aligned_divisor(NVp, target_tnv)
        while _chunked_vmem(C, ts3, tnv, itemsize) > budget and (ts3 > 128 or tnv > 128):
            if ts3 >= tnv and ts3 > 128:
                ts3 = _largest_aligned_divisor(S3p, ts3 - 128)
            else:
                tnv = _largest_aligned_divisor(NVp, tnv - 128)
        while B * (NVp // tnv) < 2 and tnv > 128:
            tnv = _largest_aligned_divisor(NVp, tnv - 128)

        vmem_need = _chunked_vmem(C, ts3, tnv, itemsize)
        vmem_limit = int(max(min(budget, 2 * vmem_need), vmem_need, 16 * 1024 * 1024))
        vmem_limit = min(vmem_limit, int(0.9 * vmem_cap))

        cost = pl.CostEstimate(
            flops=2 * B * C * NVp * S3p,
            transcendentals=0,
            bytes_accessed=int(idx.size * 4
                               + B * (NVp // tnv) * C * S3p * itemsize
                               + B * C * NVp * itemsize),
        )

        out_cnv = pl.pallas_call(
            _chunked_kernel,
            out_shape=jax.ShapeDtypeStruct((B, C, NVp), dtype),
            grid=(B, NVp // tnv, S3p // ts3),
            in_specs=[
                pl.BlockSpec((1, 1, tnv), lambda b, n, k: (b, 0, n)),
                pl.BlockSpec((1, C, ts3), lambda b, n, k: (b, 0, k)),
            ],
            out_specs=pl.BlockSpec((1, C, tnv), lambda b, n, k: (b, 0, n)),
            scratch_shapes=[pltpu.VMEM((C, tnv), jnp.float32)],
            compiler_params=pltpu.CompilerParams(
                dimension_semantics=("parallel", "parallel", "arbitrary"),
                vmem_limit_bytes=vmem_limit,
            ),
            cost_estimate=cost,
        )(idx, feat_flat)

    # (B, C, NVp) -> drop padding -> (B, N, V, C).  Transposing N*V*C output
    # values is much cheaper than transposing the C*S^3 feature volume.
    out = jnp.transpose(out_cnv[:, :, :NV], (0, 2, 1))
    return out.reshape(B, N, V, C)


class CubicFeatureSamplingFunction:
    """Drop-in analogue of the PyTorch CubicFeatureSampling_function module."""

    def __call__(self, ptcloud, cubic_features, neighborhood_size=1):
        return cubic_feature_sampling(ptcloud, cubic_features, neighborhood_size)


# ----------------------------------------------------------------------------
# Reference + test
# ----------------------------------------------------------------------------

def _reference(ptcloud, cubic_features, neighborhood_size=1):
    """Pure-JAX reference (gather) for correctness checking."""
    B, N, _ = ptcloud.shape
    _, C, S, _, _ = cubic_features.shape
    V = (2 * neighborhood_size) ** 3
    S3 = S * S * S
    idx = _vertex_indices(ptcloud, S, neighborhood_size).reshape(B, N * V)
    feat_flat = jnp.transpose(cubic_features.reshape(B, C, S3), (0, 2, 1))
    idx_c = jnp.clip(idx, 0, S3 - 1)
    g = jnp.take_along_axis(feat_flat, idx_c[:, :, None], axis=1)   # (B, N*V, C)
    g = jnp.where((idx >= 0)[:, :, None], g, 0.0)
    return g.reshape(B, N, V, C)


if __name__ == "__main__":
    key = jax.random.PRNGKey(0)
    k1, k2 = jax.random.split(key)

    B, N, C, S = 2, 32, 32, 8          # V = 8 for neighborhood_size=1
    ptcloud = jax.random.uniform(k1, (B, N, 3), jnp.float32, minval=-1.0, maxval=1.0)
    cubic_features = jax.random.normal(k2, (B, C, S, S, S), jnp.float32)

    ref = _reference(ptcloud, cubic_features, neighborhood_size=1)

    # Auto path (resident feature volume at these shapes).
    out = cubic_feature_sampling(ptcloud, cubic_features, neighborhood_size=1)
    out = jax.block_until_ready(out)
    assert out.shape == (B, N, 8, C)
    assert jnp.allclose(out, ref, atol=1e-5, rtol=1e-5)

    # Chunked fallback path (exercised explicitly with small tiles so both the
    # N*V axis and the S^3 reduction axis take multiple steps).
    out_chunked = cubic_feature_sampling(ptcloud, cubic_features, neighborhood_size=1,
                                         tile_nv=128, tile_s3=128, force_path="chunked")
    out_chunked = jax.block_until_ready(out_chunked)
    assert jnp.allclose(out_chunked, ref, atol=1e-5, rtol=1e-5)

    print("KERNEL_OK")
</pallas_src>

<mosaic_0001>
module attributes {stable_mosaic.version = 11 : i64} {
  func.func @_resident_kernel(%arg0: i32, %arg1: i32, %arg2: memref<1x1x256xi32, #tpu.memory_space<vmem>>, %arg3: memref<1x32x512xf32, #tpu.memory_space<vmem>>, %arg4: memref<1x32x256xf32, #tpu.memory_space<vmem>>) attributes {dimension_semantics = [#tpu.dimension_semantics<parallel>, #tpu.dimension_semantics<parallel>], iteration_bounds = array<i64: 2, 1>, scalar_prefetch = 0 : i64, scratch_operands = 0 : i64, tpu.core_type = #tpu.core_type<tc>, window_params = [{transform_indices = @transform_0, window_bounds = array<i64: 1, 1, 256>}, {transform_indices = @transform_1, window_bounds = array<i64: 1, 32, 512>}, {transform_indices = @transform_2, window_bounds = array<i64: 1, 32, 256>}]} {
    %c0 = arith.constant 0 : index
    %c0_0 = arith.constant 0 : index
    %c0_1 = arith.constant 0 : index
    %0 = vector.load %arg3[%c0, %c0_0, %c0_1] : memref<1x32x512xf32, #tpu.memory_space<vmem>>, vector<1x32x512xf32>
    %1 = vector.shape_cast %0 : vector<1x32x512xf32> to vector<32x512xf32>
    %c0_2 = arith.constant 0 : index
    %c0_3 = arith.constant 0 : index
    %c0_4 = arith.constant 0 : index
    %2 = vector.load %arg2[%c0_2, %c0_3, %c0_4] : memref<1x1x256xi32, #tpu.memory_space<vmem>>, vector<1x1x256xi32>
    %3 = vector.shape_cast %2 : vector<1x1x256xi32> to vector<1x256xi32>
    %4 = tpu.iota {dimensions = array<i32: 0>} : vector<512x256xi32>
    %5 = vector.broadcast %3 : vector<1x256xi32> to vector<512x256xi32>
    %6 = arith.cmpi eq, %4, %5 : vector<512x256xi32>
    %7 = arith.extui %6 : vector<512x256xi1> to vector<512x256xi32>
    %8 = arith.sitofp %7 : vector<512x256xi32> to vector<512x256xf32>
    %cst = arith.constant dense<0.000000e+00> : vector<32x256xf32>
    %9 = tpu.matmul %1, %8, %cst {dimension_numbers = #tpu.dot_dimension_numbers<[1], [0], [0], [1], [0, 0, 1, 1], [], []>} : vector<32x512xf32>, vector<512x256xf32>, vector<32x256xf32> -> vector<32x256xf32>
    %c0_5 = arith.constant 0 : index
    %c0_6 = arith.constant 0 : index
    %c0_7 = arith.constant 0 : index
    %10 = vector.load %arg4[%c0_5, %c0_6, %c0_7] : memref<1x32x256xf32, #tpu.memory_space<vmem>>, vector<1x32x256xf32>
    %11 = vector.shape_cast %10 : vector<1x32x256xf32> to vector<32x256xf32>
    %12 = vector.shape_cast %9 : vector<32x256xf32> to vector<1x32x256xf32>
    tpu.vector_store %arg4[%c0_5, %c0_6, %c0_7], %12 {strides = array<i32>} : memref<1x32x256xf32, #tpu.memory_space<vmem>>, vector<1x32x256xf32>,
    return
  }
  func.func @transform_0(%arg0: i32, %arg1: i32) -> (i32, i32, i32) {
    %c0_i32 = arith.constant 0 : i32
    %c0_i32_0 = arith.constant 0 : i32
    return %arg0, %c0_i32, %arg1 : i32, i32, i32
  }
  func.func @transform_1(%arg0: i32, %arg1: i32) -> (i32, i32, i32) {
    %c0_i32 = arith.constant 0 : i32
    %c0_i32_0 = arith.constant 0 : i32
    %c0_i32_1 = arith.constant 0 : i32
    return %arg0, %c0_i32, %c0_i32_0 : i32, i32, i32
  }
  func.func @transform_2(%arg0: i32, %arg1: i32) -> (i32, i32, i32) {
    %c0_i32 = arith.constant 0 : i32
    %c0_i32_0 = arith.constant 0 : i32
    return %arg0, %c0_i32, %arg1 : i32, i32, i32
  }
}

</mosaic_0001>

<bundles_post_ra>
// kernel: tpu_custom_call.1
= control target key start
LH: loop header
LB: loop body
LE: loop exit
PB: predicated region body
PF: predicated region fallthrough
CT: control target
= control target key end

     0   :  { %7 = vsyncpa [#allocation3], 0  ;;  %s2476_s0 = inlined_call_operand.hbm [shape: s32[2,1,256], index: 0, kind: input, shape index: {}]   ;;  %s2477_s1 = inlined_call_operand.hbm [shape: f32[2,32,512], index: 1, kind: input, shape index: {}]   ;;  %s2478_s2 = inlined_call_operand.hbm [shape: f32[2,32,256], index: 2, kind: output, shape index: {}]  }
   0x1   :  { %9 = vsyncpa [#allocation3 + $0x1], 0 }
   0x2   :  { %10 = vsyncpa [#allocation6], 0 }
   0x3   :  { %12 = vsyncpa [#allocation6 + $0x1], 0 }
   0x4   :  { %13 = vsyncpa [#allocation4], 0 }
   0x5   :  { %15 = vsyncpa [#allocation4 + $0x1], 0  ;;  %s1574_s9 = smov 0   ;;  %s1576_s10 = smov 0  }
   0x6   :  { %s1578_s11 = smov 0   ;;  %s1580_s12 = smov 0  }
   0x7   :  { %s1582_s13 = smov 0   ;;  %s1584_s14 = smov 0  }
   0x8 LB: > { %s1058_s15 = sadd.s32 4294967295, %s1552_s14   ;;  %s1059_s16 = sadd.s32 4294967294, %s1552_s14   ;;  %s1552_s14 = sphi %s1584_s14, %s21_s14   ;;  %s1548_s13 = sphi %s1582_s13, %s2503_s13   ;;  %s1544_s12 = sphi %s1580_s12, %s2502_s12   ;;  %s1540_s11 = sphi %s1578_s11, %s2501_s11   ;;  %s1536_s10 = sphi %s1576_s10, %s2500_s10   ;;  %s1532_s9 = sphi %s1574_s9, %s2499_s9  }
   0x9   : > { %s33_s17 = sadd.s32 1, %s1548_s13  ;;  %s42_s18 = sadd.s32 1, %s1540_s11 }
   0xa   : > { %p35_p0 = scmp.ge.s32.totalorder %s33_s17, 2  ;;  %p49_p1 = scmp.ne.s32.totalorder %s1540_s11, %s1536_s10 }
   0xb   : > { %p50_p2 = scmp.eq.s32.totalorder %s1552_s14, 0  ;;  %p55_p3 = scmp.ne.s32.totalorder %s1536_s10, %s1532_s9 }
   0xc   : > { %s2505_s17 = smov (%p35_p0, %s33_s17), 0  ;;  %p56_p5 = scmp.eq.s32.totalorder %s1058_s15, 0 }
   0xd   : > { %p1615_p4 = por %p50_p2, %p49_p1  ;;  %s37_s20 = ssub.s32 %s1548_s13, %s2505_s17 }
   0xe   : > { %p107_p6 = scmp.eq.s32.totalorder %s1058_s15, 1  ;;  %p40_p7 = scmp.eq.s32.totalorder %s37_s20, 0 }
   0xf   : > { %p1621_p8 = por %p56_p5, %p55_p3  ;;  %p113_p10 = scmp.eq.s32.totalorder %s1059_s16, 1 }
  0x10   : > { %p1625_p9 = por %p107_p6, %p49_p1  ;;  %p1061_p12 = scmp.ge.s32.totalorder %s1552_s14, 2 }
  0x11   : > { %s1630_s23 = scalar_select %p40_p7, %s1540_s11, %s42_s18  }
  0x12   : > { %p1632_p11 = por %p113_p10, %p55_p3  ;;  %p1351_p13 = scmp.lt.s32.totalorder %s1552_s14, 2 }
  0x13   : > { %s1639_s25 = sand.u32 1, %s1540_s11   ;;  %s1063_s27 = sshll.u32 %s1548_s13, 1 }
  0x14   : > { %s1062_s26 = sshll.u32 %s1639_s25, 1  ;;  %s143_s30 = scalar_lea.hbm %s2476_s0, %s1063_s27 }
  0x15   : > { %s137_s3 = scalar_lea.vmem [#allocation2], %s1062_s26  ;;  %s145_s5 = sshll.u32 %s143_s30, 4  ;;  %s146_s5 = int_to_ptr.hbm [resolvable:$true] %s145_s5 }
  0x16   : > { %s147_s4 = sshll.u32 %s137_s3, 4  ;;  %p1648_p0 = pnand %p1351_p13, %p1615_p4  ;;  %s148_s4 = int_to_ptr.vmem [resolvable:$true] %s147_s4 }
  0x17   : > { %p1067_p1 = scmp.ge.s32.totalorder %s1552_s14, 1  ;;  %p174_p2 = scmp.lt.s32.totalorder %s1552_s14, 3 }
  0x18   : > { %s134_s7 = scalar_lea.sflag [#allocation3], %s1639_s25  ;;  %s1064_s8 = sshll.u32 %s1639_s25, 7 }
  0x19   : > { %1343 = dma.hbm_to_vmem [thread:$0]  (!%p1648_p0), %s146_s5, 32, %s148_s4, %s134_s7  }
  0x1a   : > { %p175_p3 = pnand %p1067_p1, %p174_p2  ;;  %s1332_s15 = sshll.u32 %s1548_s13, 7 }
  0x1b   : > { %s163_s20 = scalar_lea.hbm %s2477_s1, %s1332_s15  ;;  %s158_s26 = scalar_lea.vmem [#allocation5], %s1064_s8 }
  0x1c   : > { %s166_s19 = sshll.u32 %s158_s26, 4  ;;  %s164_s27 = sshll.u32 %s163_s20, 4  ;;  %s167_s19 = int_to_ptr.vmem [resolvable:$true] %s166_s19  ;;  %s165_s27 = int_to_ptr.hbm [resolvable:$true] %s164_s27 }
  0x1d   : > { %s155_s28 = scalar_lea.sflag [#allocation6], %s1639_s25  ;;  %s1554_s29 = smov 512  }
  0x1e   : > { %s1555_s30 = smov 32   ;;  %178 = sbr.rel (%p175_p3) target bundleno = 286 (0x11e), region = 28 }
  0x1f   : > { %1346 = dma.hbm_to_vmem [thread:$0]  (!%p1648_p0), %s165_s27, 2048, %s167_s19, %s155_s28, %s1554_s29, %s1554_s29, %s1555_s30  }
  0x23   : > { %s1666_s3 = sand.u32 1, %s1536_s10  }
  0x24   : > { %s1068_s4 = sshll.u32 %s1666_s3, 1  ;;  %s181_s5 = scalar_lea.sflag [#allocation3], %s1666_s3 }
  0x25   : > { %s184_s7 = scalar_lea.vmem [#allocation2], %s1068_s4 }
  0x26   : > { %1519 = dma.done.wait (%p1621_p8), %s181_s5, 32  }
  0x27   : > { %1521 = vsyncadd (%p1621_p8), %s181_s5, 4294967264  ;;  %s1069_s25 = sshll.u32 %s1666_s3, 7  ;;  %s191_s6 = scalar_lea.sflag [#allocation6], %s1666_s3 }
  0x28   : > { %s1676_s8 = scalar_lea.vmem [#allocation5], %s1069_s25 }
  0x29   : > { %1523 = dma.done.wait (%p1621_p8), %s191_s6, 2048  }
  0x2a   : > { %1525 = vsyncadd (%p1621_p8), %s191_s6, 4294965248  ;;  %v240_v0 = vlaneseq  ;;  %v1705_v9 = vld [vmem:[%s184_s7] sm:$0x3]  ;;  %v1556_v22 = vmov 1.0   ;;  %s1070_s21 = sshll.u32 %s1666_s3, 6  ;;  %s1333_s16 = sshll.u32 %s1544_s12, 6 }
  0x2b   : > { %v1720_v14 = vperm.slane %v1705_v9, 0  ;;  %s2427_s15 = scalar_lea.vmem [#allocation7], %s1070_s21  ;;  %s945_s26 = scalar_lea.hbm %s2478_s2, %s1333_s16 }
  0x2c   : > { %v1682_v1 = vshrl.u32 %v240_v0, 7  ;;  %s946_s19 = sshll.u32 %s2427_s15, 4  ;;  %s948_s27 = sshll.u32 %s945_s26, 4  ;;  %s947_s19 = int_to_ptr.vmem [resolvable:$true] %s946_s19  ;;  %s949_s27 = int_to_ptr.hbm [resolvable:$true] %s948_s27 }
  0x2d   : > { %s932_s12 = scalar_lea.sflag [#allocation4], %s1666_s3  ;;  %s1480_s28 = sshra.s32 %s949_s27, 4  ;;  %s1481_s28 = int_to_ptr.hbm [resolvable:$true] %s1480_s28 }
  0x2e   : > { %v1685_v2 = vadd.s32 376, %v1682_v1  ;;  %v1688_v3 = vadd.s32 368, %v1682_v1  ;;  %v1691_v4 = vadd.s32 504, %v1682_v1  ;;  %v1694_v5 = vadd.s32 120, %v1682_v1  ;;  %s1482_s29 = scalar_lea.hbm %s1481_s28, 64  ;;  %s1486_s5 = scalar_lea.hbm %s2478_s2, 128 }
  0x2f   : > { %v1697_v6 = vadd.s32 248, %v1682_v1  ;;  %v1700_v7 = vadd.s32 360, %v1682_v1  ;;  %v1703_v8 = vadd.s32 496, %v1682_v1  ;;  %v1708_v10 = vadd.s32 112, %v1682_v1  ;;  %p1483_p4 = scmp.ne.s32.totalorder %s1481_s28, %s1482_s29  ;;  %p1487_p7 = scmp.lt.s32.totalorder %s1481_s28, %s2478_s2 }
  0x30   : > { %v1711_v11 = vadd.s32 240, %v1682_v1  ;;  %v1714_v12 = vadd.s32 352, %v1682_v1  ;;  %v1717_v13 = vadd.s32 488, %v1682_v1  ;;  %v1723_v15 = vadd.s32 104, %v1682_v1  ;;  %p1488_p8 = scmp.lt.s32.totalorder %s1486_s5, %s1482_s29 }
  0x31   : > { %v1726_v16 = vadd.s32 232, %v1682_v1  ;;  %v1729_v17 = vadd.s32 344, %v1682_v1  ;;  %v1732_v18 = vadd.s32 480, %v1682_v1  ;;  %v1735_v19 = vadd.s32 96, %v1682_v1  ;;  %p1484_p5 = pnand %p1483_p4, %p1625_p9 }
  0x32   : > { %v1738_v20 = vadd.s32 224, %v1682_v1  ;;  %v1741_v21 = vadd.s32 336, %v1682_v1  ;;  %vm401_vm0 = vcmp.eq.s32.totalorder %v1685_v2, %v1720_v14  ;;  %vm399_vm1 = vcmp.eq.s32.totalorder %v1688_v3, %v1720_v14  ;;  %p1489_p10 = por %p1488_p8, %p1487_p7 }
  0x33   : > { %vm433_vm2 = vcmp.eq.s32.totalorder %v1691_v4, %v1720_v14  ;;  %vm337_vm3 = vcmp.eq.s32.totalorder %v1694_v5, %v1720_v14  ;;  %1231 = vmatpush.msk.msra.mxu2 %vm401_vm0, %v1556_v22  ;;  %vm369_vm4 = vcmp.eq.s32.totalorder %v1697_v6, %v1720_v14  ;;  %vm431_vm5 = vcmp.eq.s32.totalorder %v1703_v8, %v1720_v14  ;;  %p1485_p6 = pneg %p1484_p5 }
  0x34   : > { %1247 = vmatpush.msk.msra.mxu3 %vm433_vm2, %v1556_v22  ;;  %v1758_v23 = vadd.s32 472, %v1682_v1  ;;  %v1761_v24 = vadd.s32 88, %v1682_v1  ;;  %1199 = vmatpush.msk.msra.mxu0 %vm337_vm3, %v1556_v22  ;;  %vm397_vm6 = vcmp.eq.s32.totalorder %v1700_v7, %v1720_v14  ;;  %vm335_vm7 = vcmp.eq.s32.totalorder %v1708_v10, %v1720_v14 }
  0x35   : > { %1215 = vmatpush.msk.msra.mxu1 %vm369_vm4, %v1556_v22  ;;  %vm367_vm8 = vcmp.eq.s32.totalorder %v1711_v11, %v1720_v14  ;;  %v1772_v25 = vadd.s32 216, %v1682_v1  ;;  %1232 = vmatpush.msk.msra.mxu2 %vm399_vm1, %v1556_v22  ;;  %vm429_vm9 = vcmp.eq.s32.totalorder %v1717_v13, %v1720_v14  ;;  %vm333_vm10 = vcmp.eq.s32.totalorder %v1723_v15, %v1720_v14  ;;  %p1490_p13 = pnand %p1489_p10, %p1485_p6 }
  0x36   : > { %1248 = vmatpush.msk.msra.mxu3 %vm431_vm5, %v1556_v22  ;;  %vm365_vm11 = vcmp.eq.s32.totalorder %v1726_v16, %v1720_v14  ;;  %v1786_v26 = vadd.s32 328, %v1682_v1  ;;  %1200 = vmatpush.msk.msra.mxu0 %vm335_vm7, %v1556_v22  ;;  %vm395_vm12 = vcmp.eq.s32.totalorder %v1714_v12, %v1720_v14  ;;  %vm427_vm13 = vcmp.eq.s32.totalorder %v1732_v18, %v1720_v14 }
  0x37   : > { %1216 = vmatpush.msk.msra.mxu1 %vm367_vm8, %v1556_v22  ;;  %v1795_v27 = vadd.s32 464, %v1682_v1  ;;  %v1798_v28 = vadd.s32 80, %v1682_v1  ;;  %1233 = vmatpush.msk.msra.mxu2 %vm397_vm6, %v1556_v22  ;;  %vm331_vm14 = vcmp.eq.s32.totalorder %v1735_v19, %v1720_v14  ;;  %vm363_vm15 = vcmp.eq.s32.totalorder %v1738_v20, %v1720_v14 }
  0x38   : > { %1249 = vmatpush.msk.msra.mxu3 %vm429_vm9, %v1556_v22  ;;  %v1810_v29 = vadd.s32 208, %v1682_v1  ;;  %1201 = vmatpush.msk.msra.mxu0 %vm333_vm10, %v1556_v22  ;;  %vm393_vm0 = vcmp.eq.s32.totalorder %v1729_v17, %v1720_v14  ;;  %vm425_vm1 = vcmp.eq.s32.totalorder %v1758_v23, %v1720_v14  ;;  %v1819_v30 = vadd.s32 456, %v1682_v1 }
  0x39   : > { %1217 = vmatpush.msk.msra.mxu1 %vm365_vm11, %v1556_v22  ;;  %v1822_v31 = vadd.s32 72, %v1682_v1  ;;  %1234 = vmatpush.msk.msra.mxu2 %vm395_vm12, %v1556_v22  ;;  %vm391_vm2 = vcmp.eq.s32.totalorder %v1741_v21, %v1720_v14  ;;  %vm329_vm3 = vcmp.eq.s32.totalorder %v1761_v24, %v1720_v14  ;;  %vm361_vm4 = vcmp.eq.s32.totalorder %v1772_v25, %v1720_v14 }
  0x3a   : > { %1250 = vmatpush.msk.msra.mxu3 %vm427_vm13, %v1556_v22  ;;  %v1833_v32 = vadd.s32 200, %v1682_v1  ;;  %1202 = vmatpush.msk.msra.mxu0 %vm331_vm14, %v1556_v22  ;;  %vm389_vm5 = vcmp.eq.s32.totalorder %v1786_v26, %v1720_v14  ;;  %vm423_vm6 = vcmp.eq.s32.totalorder %v1795_v27, %v1720_v14  ;;  %vm327_vm7 = vcmp.eq.s32.totalorder %v1798_v28, %v1720_v14 }
  0x3b   : > { %1218 = vmatpush.msk.msra.mxu1 %vm363_vm15, %v1556_v22  ;;  %v1844_v33 = vadd.s32 320, %v1682_v1  ;;  %1235 = vmatpush.msk.msra.mxu2 %vm393_vm0, %v1556_v22  ;;  %vm359_vm8 = vcmp.eq.s32.totalorder %v1810_v29, %v1720_v14  ;;  %v1857_v34 = vadd.s32 448, %v1682_v1  ;;  %v1860_v35 = vadd.s32 64, %v1682_v1 }
  0x3c   : > { %1251 = vmatpush.msk.msra.mxu3 %vm425_vm1, %v1556_v22  ;;  %v1863_v36 = vadd.s32 192, %v1682_v1  ;;  %1203 = vmatpush.msk.msra.mxu0 %vm329_vm3, %v1556_v22  ;;  %vm421_vm9 = vcmp.eq.s32.totalorder %v1819_v30, %v1720_v14  ;;  %vm325_vm10 = vcmp.eq.s32.totalorder %v1822_v31, %v1720_v14  ;;  %v1872_v37 = vadd.s32 312, %v1682_v1 }
  0x3d   : > { %1219 = vmatpush.msk.msra.mxu1 %vm361_vm4, %v1556_v22  ;;  %v1875_v38 = vadd.s32 440, %v1682_v1  ;;  %1236 = vmatpush.msk.msra.mxu2 %vm391_vm2, %v1556_v22  ;;  %vm357_vm11 = vcmp.eq.s32.totalorder %v1833_v32, %v1720_v14  ;;  %v1888_v39 = vadd.s32 304, %v1682_v1  ;;  %v1891_v40 = vadd.s32 56, %v1682_v1 }
  0x3e   : > { %1252 = vmatpush.msk.msra.mxu3 %vm423_vm6, %v1556_v22  ;;  %v1894_v41 = vadd.s32 184, %v1682_v1  ;;  %1204 = vmatpush.msk.msra.mxu0 %vm327_vm7, %v1556_v22  ;;  %vm387_vm12 = vcmp.eq.s32.totalorder %v1844_v33, %v1720_v14  ;;  %vm419_vm13 = vcmp.eq.s32.totalorder %v1857_v34, %v1720_v14  ;;  %vm323_vm14 = vcmp.eq.s32.totalorder %v1860_v35, %v1720_v14 }
  0x3f   : > { %1220 = vmatpush.msk.msra.mxu1 %vm359_vm8, %v1556_v22  ;;  %v1911_v42 = vadd.s32 296, %v1682_v1  ;;  %1237 = vmatpush.msk.msra.mxu2 %vm389_vm5, %v1556_v22  ;;  %vm355_vm15 = vcmp.eq.s32.totalorder %v1863_v36, %v1720_v14  ;;  %v1924_v43 = vadd.s32 432, %v1682_v1  ;;  %v1927_v44 = vadd.s32 48, %v1682_v1 }
  0x40   : > { %1253 = vmatpush.msk.msra.mxu3 %vm421_vm9, %v1556_v22  ;;  %v1930_v45 = vadd.s32 176, %v1682_v1  ;;  %1205 = vmatpush.msk.msra.mxu0 %vm325_vm10, %v1556_v22  ;;  %vm385_vm0 = vcmp.eq.s32.totalorder %v1872_v37, %v1720_v14  ;;  %vm417_vm1 = vcmp.eq.s32.totalorder %v1875_v38, %v1720_v14  ;;  %v1945_v46 = vadd.s32 424, %v1682_v1 }
  0x41   : > { %1221 = vmatpush.msk.msra.mxu1 %vm357_vm11, %v1556_v22  ;;  %v1948_v47 = vadd.s32 40, %v1682_v1  ;;  %1238 = vmatpush.msk.msra.mxu2 %vm387_vm12, %v1556_v22  ;;  %vm383_vm2 = vcmp.eq.s32.totalorder %v1888_v39, %v1720_v14  ;;  %vm321_vm3 = vcmp.eq.s32.totalorder %v1891_v40, %v1720_v14  ;;  %vm353_vm4 = vcmp.eq.s32.totalorder %v1894_v41, %v1720_v14 }
  0x42   : > { %1254 = vmatpush.msk.msra.mxu3 %vm419_vm13, %v1556_v22  ;;  %v1965_v48 = vadd.s32 168, %v1682_v1  ;;  %1206 = vmatpush.msk.msra.mxu0 %vm323_vm14, %v1556_v22  ;;  %vm381_vm5 = vcmp.eq.s32.totalorder %v1911_v42, %v1720_v14  ;;  %vm415_vm6 = vcmp.eq.s32.totalorder %v1924_v43, %v1720_v14  ;;  %vm319_vm7 = vcmp.eq.s32.totalorder %v1927_v44, %v1720_v14 }
  0x43   : > { %1222 = vmatpush.msk.msra.mxu1 %vm355_vm15, %v1556_v22  ;;  %v1982_v49 = vadd.s32 288, %v1682_v1  ;;  %1239 = vmatpush.msk.msra.mxu2 %vm385_vm0, %v1556_v22  ;;  %vm351_vm8 = vcmp.eq.s32.totalorder %v1930_v45, %v1720_v14  ;;  %v1995_v50 = vadd.s32 416, %v1682_v1  ;;  %v1998_v51 = vadd.s32 32, %v1682_v1 }
  0x44   : > { %1255 = vmatpush.msk.msra.mxu3 %vm417_vm1, %v1556_v22  ;;  %v2001_v52 = vadd.s32 160, %v1682_v1  ;;  %1207 = vmatpush.msk.msra.mxu0 %vm321_vm3, %v1556_v22  ;;  %vm413_vm9 = vcmp.eq.s32.totalorder %v1945_v46, %v1720_v14  ;;  %vm317_vm10 = vcmp.eq.s32.totalorder %v1948_v47, %v1720_v14  ;;  %v2010_v53 = vadd.s32 280, %v1682_v1 }
  0x45   : > { %1223 = vmatpush.msk.msra.mxu1 %vm353_vm4, %v1556_v22  ;;  %v2013_v54 = vadd.s32 408, %v1682_v1  ;;  %1240 = vmatpush.msk.msra.mxu2 %vm383_vm2, %v1556_v22  ;;  %vm349_vm11 = vcmp.eq.s32.totalorder %v1965_v48, %v1720_v14  ;;  %v2026_v55 = vadd.s32 272, %v1682_v1  ;;  %v2029_v56 = vadd.s32 24, %v1682_v1 }
  0x46   : > { %1256 = vmatpush.msk.msra.mxu3 %vm415_vm6, %v1556_v22  ;;  %v2032_v57 = vadd.s32 152, %v1682_v1  ;;  %1208 = vmatpush.msk.msra.mxu0 %vm319_vm7, %v1556_v22  ;;  %vm379_vm12 = vcmp.eq.s32.totalorder %v1982_v49, %v1720_v14  ;;  %vm411_vm13 = vcmp.eq.s32.totalorder %v1995_v50, %v1720_v14  ;;  %vm315_vm14 = vcmp.eq.s32.totalorder %v1998_v51, %v1720_v14 }
  0x47   : > { %2489 = vst [vmem:[#allocation11_spill] sm:$0xff] %v2029_v56  ;;  %1224 = vmatpush.msk.msra.mxu1 %vm351_vm8, %v1556_v22  ;;  %1241 = vmatpush.msk.msra.mxu2 %vm381_vm5, %v1556_v22  ;;  %vm347_vm15 = vcmp.eq.s32.totalorder %v2001_v52, %v1720_v14  ;;  %v2059_v58 = vadd.s32 400, %v1682_v1  ;;  %v2062_v59 = vadd.s32 16, %v1682_v1  ;;  %v2065_v60 = vadd.s32 144, %v1682_v1 }
  0x48   : > { %2490 = vst [vmem:[#allocation12_spill] sm:$0xff] %v2032_v57  ;;  %1257 = vmatpush.msk.msra.mxu3 %vm413_vm9, %v1556_v22  ;;  %1209 = vmatpush.msk.msra.mxu0 %vm317_vm10, %v1556_v22  ;;  %vm377_vm0 = vcmp.eq.s32.totalorder %v2010_v53, %v1720_v14  ;;  %vm409_vm1 = vcmp.eq.s32.totalorder %v2013_v54, %v1720_v14  ;;  %v2080_v61 = vadd.s32 264, %v1682_v1  ;;  %v2083_v62 = vadd.s32 392, %v1682_v1 }
  0x49   : > { %2491 = vst [vmem:[#allocation13_spill] sm:$0xff] %v2059_v58  ;;  %1225 = vmatpush.msk.msra.mxu1 %vm349_vm11, %v1556_v22  ;;  %1242 = vmatpush.msk.msra.mxu2 %vm379_vm12, %v1556_v22  ;;  %vm375_vm2 = vcmp.eq.s32.totalorder %v2026_v55, %v1720_v14  ;;  %vm313_vm3 = vcmp.eq.s32.totalorder %v2029_v56, %v1720_v14  ;;  %v2094_v63 = vadd.s32 8, %v1682_v1  ;;  %v2107_v0 = vadd.s32 256, %v1682_v1 }
  0x4a   : > { %1258 = vmatpush.msk.msra.mxu3 %vm411_vm13, %v1556_v22  ;;  %vm345_vm4 = vcmp.eq.s32.totalorder %v2032_v57, %v1720_v14  ;;  %1210 = vmatpush.msk.msra.mxu0 %vm315_vm14, %v1556_v22  ;;  %vm407_vm5 = vcmp.eq.s32.totalorder %v2059_v58, %v1720_v14  ;;  %v2110_v57 = vadd.s32 136, %v1682_v1  ;;  %v2113_v56 = vadd.s32 384, %v1682_v1 }
  0x4b   : > { %2492 = vst [vmem:[#allocation14_spill] sm:$0xff] %v2094_v63  ;;  %1226 = vmatpush.msk.msra.mxu1 %vm347_vm15, %v1556_v22  ;;  %1243 = vmatpush.msk.msra.mxu2 %vm377_vm0, %v1556_v22  ;;  %vm311_vm6 = vcmp.eq.s32.totalorder %v2062_v59, %v1720_v14  ;;  %vm343_vm7 = vcmp.eq.s32.totalorder %v2065_v60, %v1720_v14  ;;  %v2128_v58 = vperm.slane %v1705_v9, 1  ;;  %v2146_v9 = vadd.s32 128, %v1682_v1 }
  0x4c   : > { %2493 = vst [vmem:[#allocation15_spill] sm:$0xff] %v2110_v57  ;;  %1259 = vmatpush.msk.msra.mxu3 %vm409_vm1, %v1556_v22  ;;  %1211 = vmatpush.msk.msra.mxu0 %vm313_vm3, %v1556_v22  ;;  %vm373_vm8 = vcmp.eq.s32.totalorder %v2080_v61, %v1720_v14  ;;  %vm405_vm9 = vcmp.eq.s32.totalorder %v2083_v62, %v1720_v14 }
  0x4d   : > { %1227 = vmatpush.msk.msra.mxu1 %vm345_vm4, %v1556_v22  ;;  %1244 = vmatpush.msk.msra.mxu2 %vm375_vm2, %v1556_v22  ;;  %vm309_vm10 = vcmp.eq.s32.totalorder %v2094_v63, %v1720_v14  ;;  %vm341_vm11 = vcmp.eq.s32.totalorder %v2110_v57, %v1720_v14  ;;  %vm371_vm12 = vcmp.eq.s32.totalorder %v2107_v0, %v1720_v14  ;;  %v2157_v63 = vld [vmem:[%s1676_s8 + $0x10] sm:$0xff]  ;;  %v2160_v57 = vld [vmem:[%s1676_s8 + $0x18] sm:$0xff] }
  0x4e   : > { %1260 = vmatpush.msk.msra.mxu3 %vm407_vm5, %v1556_v22  ;;  %1212 = vmatpush.msk.msra.mxu0 %vm311_vm6, %v1556_v22  ;;  %vm403_vm13 = vcmp.eq.s32.totalorder %v2113_v56, %v1720_v14  ;;  %vm402_vm14 = vcmp.eq.s32.totalorder %v1685_v2, %v2128_v58  ;;  %vm434_vm15 = vcmp.eq.s32.totalorder %v1691_v4, %v2128_v58  ;;  %v2179_v2 = vld [vmem:[%s1676_s8] sm:$0xff]  ;;  %v2184_v4 = vld [vmem:[%s1676_s8 + $0x8] sm:$0xff] }
  0x4f   : > { %1228 = vmatpush.msk.msra.mxu1 %vm343_vm7, %v1556_v22  ;;  %1245 = vmatpush.msk.msra.mxu2 %vm373_vm8, %v1556_v22  ;;  %vm307_vm0 = vcmp.eq.s32.totalorder %v1682_v1, %v1720_v14  ;;  %vm339_vm1 = vcmp.eq.s32.totalorder %v2146_v9, %v1720_v14  ;;  %vm400_vm2 = vcmp.eq.s32.totalorder %v1688_v3, %v2128_v58  ;;  %v2211_v3 = vld [vmem:[%s1676_s8 + $0x30] sm:$0xff]  ;;  %v238_v14 = vld [vmem:[%s1676_s8 + $0x78] sm:$0xff] }
  0x50   : > { %1261 = vmatpush.msk.msra.mxu3 %vm405_vm9, %v1556_v22  ;;  %1213 = vmatpush.msk.msra.mxu0 %vm309_vm10, %v1556_v22  ;;  %vm338_vm3 = vcmp.eq.s32.totalorder %v1694_v5, %v2128_v58  ;;  %vm370_vm4 = vcmp.eq.s32.totalorder %v1697_v6, %v2128_v58  ;;  %vm398_vm5 = vcmp.eq.s32.totalorder %v1700_v7, %v2128_v58  ;;  %v2228_v5 = vld [vmem:[%s1676_s8 + $0x38] sm:$0xff]  ;;  %v2243_v6 = vld [vmem:[%s1676_s8 + $0x20] sm:$0xff]  ;;  %v2248_v7 = vld [vmem:[%s1676_s8 + $0x28] sm:$0xff] }
  0x51   : > { %1229 = vmatpush.msk.msra.mxu1 %vm341_vm11, %v1556_v22  ;;  %1246 = vmatpush.msk.msra.mxu2 %vm371_vm12, %v1556_v22  ;;  %vm432_vm6 = vcmp.eq.s32.totalorder %v1703_v8, %v2128_v58  ;;  %vm336_vm7 = vcmp.eq.s32.totalorder %v1708_v10, %v2128_v58  ;;  %vm368_vm8 = vcmp.eq.s32.totalorder %v1711_v11, %v2128_v58  ;;  %v2275_v8 = vld [vmem:[%s1676_s8 + $0x50] sm:$0xff]  ;;  %v2292_v10 = vld [vmem:[%s1676_s8 + $0x58] sm:$0xff]  ;;  %v2307_v11 = vld [vmem:[%s1676_s8 + $0x40] sm:$0xff] }
  0x52   : > { %1262 = vmatpush.msk.msra.mxu3 %vm403_vm13, %v1556_v22  ;;  %765 = vmatmul.f32.vlgmr.msra.gmra.mxu2 %v2157_v63  ;;  %vm396_vm9 = vcmp.eq.s32.totalorder %v1714_v12, %v2128_v58  ;;  %vm430_vm10 = vcmp.eq.s32.totalorder %v1717_v13, %v2128_v58  ;;  %vm334_vm11 = vcmp.eq.s32.totalorder %v1723_v15, %v2128_v58  ;;  %v2312_v12 = vld [vmem:[%s1676_s8 + $0x48] sm:$0xff]  ;;  %v2339_v13 = vld [vmem:[%s1676_s8 + $0x70] sm:$0xff]  ;;  %v235_v15 = vld [vmem:[%s1676_s8 + $0x60] sm:$0xff] }
  0x53   : > { %794 = vmatmul.f32.vlgmr.msra.gmra.mxu3 %v2160_v57  ;;  %1295 = vmatpush.msk.msrb.mxu2 %vm402_vm14, %v1556_v22  ;;  %vm366_vm12 = vcmp.eq.s32.totalorder %v1726_v16, %v2128_v58  ;;  %vm394_vm13 = vcmp.eq.s32.totalorder %v1729_v17, %v2128_v58  ;;  %vm428_vm14 = vcmp.eq.s32.totalorder %v1732_v18, %v2128_v58  ;;  %v236_v16 = vld [vmem:[%s1676_s8 + $0x68] sm:$0xff]  ;;  %v2494_v17 = vld [vmem:[#allocation11_spill] sm:$0xff] }
  0x54   : > { %1311 = vmatpush.msk.msrb.mxu3 %vm434_vm15, %v1556_v22  ;;  %1214 = vmatpush.msk.msra.mxu0 %vm307_vm0, %v1556_v22  ;;  %vm332_vm15 = vcmp.eq.s32.totalorder %v1735_v19, %v2128_v58  ;;  %vm364_vm0 = vcmp.eq.s32.totalorder %v1738_v20, %v2128_v58  ;;  %v2495_v18 = vld [vmem:[#allocation12_spill] sm:$0xff]  ;;  %v2496_v19 = vld [vmem:[#allocation13_spill] sm:$0xff]  ;;  %v2497_v20 = vld [vmem:[#allocation14_spill] sm:$0xff] }
  0x55   : > { %1230 = vmatpush.msk.msra.mxu1 %vm339_vm1, %v1556_v22  ;;  %1296 = vmatpush.msk.msrb.mxu2 %vm400_vm2, %v1556_v22  ;;  %vm392_vm1 = vcmp.eq.s32.totalorder %v1741_v21, %v2128_v58  ;;  %vm426_vm2 = vcmp.eq.s32.totalorder %v1758_v23, %v2128_v58  ;;  %v2498_v21 = vld [vmem:[#allocation15_spill] sm:$0xff] }
  0x56   : > { %707 = vmatmul.f32.vlgmr.msra.gmra.mxu0 %v2179_v2  ;;  %736 = vmatmul.f32.vlgmr.msra.gmra.mxu1 %v2184_v4 }
  0x57   : > { %1263 = vmatpush.msk.msrb.mxu0 %vm338_vm3, %v1556_v22  ;;  %1279 = vmatpush.msk.msrb.mxu1 %vm370_vm4, %v1556_v22  ;;  %vm330_vm3 = vcmp.eq.s32.totalorder %v1761_v24, %v2128_v58  ;;  %vm362_vm4 = vcmp.eq.s32.totalorder %v1772_v25, %v2128_v58 }
  0x58   : > { %1297 = vmatpush.msk.msrb.mxu2 %vm398_vm5, %v1556_v22  ;;  %1312 = vmatpush.msk.msrb.mxu3 %vm432_vm6, %v1556_v22  ;;  %vm390_vm5 = vcmp.eq.s32.totalorder %v1786_v26, %v2128_v58  ;;  %vm424_vm6 = vcmp.eq.s32.totalorder %v1795_v27, %v2128_v58 }
  0x59   : > { %1264 = vmatpush.msk.msrb.mxu0 %vm336_vm7, %v1556_v22  ;;  %1280 = vmatpush.msk.msrb.mxu1 %vm368_vm8, %v1556_v22  ;;  %vm328_vm7 = vcmp.eq.s32.totalorder %v1798_v28, %v2128_v58  ;;  %vm360_vm8 = vcmp.eq.s32.totalorder %v1810_v29, %v2128_v58 }
  0x5a   : > { %1298 = vmatpush.msk.msrb.mxu2 %vm396_vm9, %v1556_v22  ;;  %1313 = vmatpush.msk.msrb.mxu3 %vm430_vm10, %v1556_v22  ;;  %vm388_vm9 = vcmp.eq.s32.totalorder %v1844_v33, %v2128_v58  ;;  %vm422_vm10 = vcmp.eq.s32.totalorder %v1819_v30, %v2128_v58 }
  0x5b   : > { %768 = vmatmul.f32.gmra.mxu2 %v2211_v3  ;;  %1265 = vmatpush.msk.msrb.mxu0 %vm334_vm11, %v1556_v22  ;;  %vm326_vm11 = vcmp.eq.s32.totalorder %v1822_v31, %v2128_v58 }
  0x5c   : > { %1281 = vmatpush.msk.msrb.mxu1 %vm366_vm12, %v1556_v22  ;;  %1299 = vmatpush.msk.msrb.mxu2 %vm394_vm13, %v1556_v22  ;;  %vm358_vm12 = vcmp.eq.s32.totalorder %v1833_v32, %v2128_v58  ;;  %vm386_vm13 = vcmp.eq.s32.totalorder %v1872_v37, %v2128_v58 }
  0x5d   : > { %1314 = vmatpush.msk.msrb.mxu3 %vm428_vm14, %v1556_v22  ;;  %1266 = vmatpush.msk.msrb.mxu0 %vm332_vm15, %v1556_v22  ;;  %vm420_vm14 = vcmp.eq.s32.totalorder %v1857_v34, %v2128_v58  ;;  %vm324_vm15 = vcmp.eq.s32.totalorder %v1860_v35, %v2128_v58 }
  0x5e   : > { %797 = vmatmul.f32.gmra.mxu3 %v2228_v5  ;;  %1282 = vmatpush.msk.msrb.mxu1 %vm364_vm0, %v1556_v22  ;;  %vm356_vm0 = vcmp.eq.s32.totalorder %v1863_v36, %v2128_v58 }
  0x5f   : > { %1300 = vmatpush.msk.msrb.mxu2 %vm392_vm1, %v1556_v22  ;;  %1315 = vmatpush.msk.msrb.mxu3 %vm426_vm2, %v1556_v22  ;;  %vm384_vm1 = vcmp.eq.s32.totalorder %v1888_v39, %v2128_v58  ;;  %vm418_vm2 = vcmp.eq.s32.totalorder %v1875_v38, %v2128_v58 }
  0x60   : > { %710 = vmatmul.f32.gmra.mxu0 %v2243_v6  ;;  %739 = vmatmul.f32.gmra.mxu1 %v2248_v7 }
  0x61   : > { %1267 = vmatpush.msk.msrb.mxu0 %vm330_vm3, %v1556_v22  ;;  %1283 = vmatpush.msk.msrb.mxu1 %vm362_vm4, %v1556_v22  ;;  %vm322_vm3 = vcmp.eq.s32.totalorder %v1891_v40, %v2128_v58  ;;  %vm354_vm4 = vcmp.eq.s32.totalorder %v1894_v41, %v2128_v58 }
  0x62   : > { %1301 = vmatpush.msk.msrb.mxu2 %vm390_vm5, %v1556_v22  ;;  %1316 = vmatpush.msk.msrb.mxu3 %vm424_vm6, %v1556_v22  ;;  %vm382_vm5 = vcmp.eq.s32.totalorder %v1911_v42, %v2128_v58  ;;  %vm416_vm6 = vcmp.eq.s32.totalorder %v1924_v43, %v2128_v58 }
  0x63   : > { %1268 = vmatpush.msk.msrb.mxu0 %vm328_vm7, %v1556_v22  ;;  %1284 = vmatpush.msk.msrb.mxu1 %vm360_vm8, %v1556_v22  ;;  %vm320_vm7 = vcmp.eq.s32.totalorder %v1927_v44, %v2128_v58  ;;  %vm352_vm8 = vcmp.eq.s32.totalorder %v1930_v45, %v2128_v58 }
  0x64   : > { %1302 = vmatpush.msk.msrb.mxu2 %vm388_vm9, %v1556_v22  ;;  %1317 = vmatpush.msk.msrb.mxu3 %vm422_vm10, %v1556_v22  ;;  %vm380_vm9 = vcmp.eq.s32.totalorder %v1982_v49, %v2128_v58  ;;  %vm414_vm10 = vcmp.eq.s32.totalorder %v1945_v46, %v2128_v58 }
  0x65   : > { %771 = vmatmul.f32.gmra.mxu2 %v2275_v8  ;;  %1269 = vmatpush.msk.msrb.mxu0 %vm326_vm11, %v1556_v22  ;;  %vm318_vm11 = vcmp.eq.s32.totalorder %v1948_v47, %v2128_v58 }
  0x66   : > { %1285 = vmatpush.msk.msrb.mxu1 %vm358_vm12, %v1556_v22  ;;  %1303 = vmatpush.msk.msrb.mxu2 %vm386_vm13, %v1556_v22  ;;  %vm350_vm12 = vcmp.eq.s32.totalorder %v1965_v48, %v2128_v58  ;;  %vm378_vm13 = vcmp.eq.s32.totalorder %v2010_v53, %v2128_v58 }
  0x67   : > { %1318 = vmatpush.msk.msrb.mxu3 %vm420_vm14, %v1556_v22  ;;  %1270 = vmatpush.msk.msrb.mxu0 %vm324_vm15, %v1556_v22  ;;  %vm412_vm14 = vcmp.eq.s32.totalorder %v1995_v50, %v2128_v58  ;;  %vm316_vm15 = vcmp.eq.s32.totalorder %v1998_v51, %v2128_v58 }
  0x68   : > { %800 = vmatmul.f32.gmra.mxu3 %v2292_v10  ;;  %1286 = vmatpush.msk.msrb.mxu1 %vm356_vm0, %v1556_v22  ;;  %vm348_vm0 = vcmp.eq.s32.totalorder %v2001_v52, %v2128_v58 }
  0x69   : > { %1304 = vmatpush.msk.msrb.mxu2 %vm384_vm1, %v1556_v22  ;;  %1319 = vmatpush.msk.msrb.mxu3 %vm418_vm2, %v1556_v22  ;;  %vm376_vm1 = vcmp.eq.s32.totalorder %v2026_v55, %v2128_v58  ;;  %vm410_vm2 = vcmp.eq.s32.totalorder %v2013_v54, %v2128_v58 }
  0x6a   : > { %713 = vmatmul.f32.gmra.mxu0 %v2307_v11  ;;  %742 = vmatmul.f32.gmra.mxu1 %v2312_v12 }
  0x6b   : > { %1271 = vmatpush.msk.msrb.mxu0 %vm322_vm3, %v1556_v22  ;;  %1287 = vmatpush.msk.msrb.mxu1 %vm354_vm4, %v1556_v22  ;;  %vm314_vm3 = vcmp.eq.s32.totalorder %v2494_v17, %v2128_v58  ;;  %vm346_vm4 = vcmp.eq.s32.totalorder %v2495_v18, %v2128_v58 }
  0x6c   : > { %1305 = vmatpush.msk.msrb.mxu2 %vm382_vm5, %v1556_v22  ;;  %1320 = vmatpush.msk.msrb.mxu3 %vm416_vm6, %v1556_v22  ;;  %vm374_vm5 = vcmp.eq.s32.totalorder %v2080_v61, %v2128_v58  ;;  %vm408_vm6 = vcmp.eq.s32.totalorder %v2496_v19, %v2128_v58 }
  0x6d   : > { %1272 = vmatpush.msk.msrb.mxu0 %vm320_vm7, %v1556_v22  ;;  %1288 = vmatpush.msk.msrb.mxu1 %vm352_vm8, %v1556_v22  ;;  %vm312_vm7 = vcmp.eq.s32.totalorder %v2062_v59, %v2128_v58  ;;  %vm344_vm8 = vcmp.eq.s32.totalorder %v2065_v60, %v2128_v58 }
  0x6e   : > { %1306 = vmatpush.msk.msrb.mxu2 %vm380_vm9, %v1556_v22  ;;  %1321 = vmatpush.msk.msrb.mxu3 %vm414_vm10, %v1556_v22  ;;  %vm372_vm9 = vcmp.eq.s32.totalorder %v2107_v0, %v2128_v58  ;;  %vm406_vm10 = vcmp.eq.s32.totalorder %v2083_v62, %v2128_v58 }
  0x6f   : > { %774 = vmatmul.f32.gmra.mxu2 %v2339_v13  ;;  %1273 = vmatpush.msk.msrb.mxu0 %vm318_vm11, %v1556_v22  ;;  %vm310_vm11 = vcmp.eq.s32.totalorder %v2497_v20, %v2128_v58 }
  0x70   : > { %1289 = vmatpush.msk.msrb.mxu1 %vm350_vm12, %v1556_v22  ;;  %1307 = vmatpush.msk.msrb.mxu2 %vm378_vm13, %v1556_v22  ;;  %vm342_vm12 = vcmp.eq.s32.totalorder %v2498_v21, %v2128_v58  ;;  %vm404_vm13 = vcmp.eq.s32.totalorder %v2113_v56, %v2128_v58 }
  0x71   : > { %1322 = vmatpush.msk.msrb.mxu3 %vm412_vm14, %v1556_v22  ;;  %1274 = vmatpush.msk.msrb.mxu0 %vm316_vm15, %v1556_v22  ;;  %vm308_vm14 = vcmp.eq.s32.totalorder %v1682_v1, %v2128_v58  ;;  %vm340_vm15 = vcmp.eq.s32.totalorder %v2146_v9, %v2128_v58 }
  0x72   : > { %803 = vmatmul.f32.gmra.mxu3 %v238_v14  ;;  %1290 = vmatpush.msk.msrb.mxu1 %vm348_vm0, %v1556_v22 }
  0x73   : > { %1308 = vmatpush.msk.msrb.mxu2 %vm376_vm1, %v1556_v22  ;;  %1323 = vmatpush.msk.msrb.mxu3 %vm410_vm2, %v1556_v22 }
  0x74   : > { %716 = vmatmul.f32.gmra.mxu0 %v235_v15  ;;  %745 = vmatmul.f32.gmra.mxu1 %v236_v16 }
  0x75   : > { %1275 = vmatpush.msk.msrb.mxu0 %vm314_vm3, %v1556_v22  ;;  %1291 = vmatpush.msk.msrb.mxu1 %vm346_vm4, %v1556_v22 }
  0x76   : > { %1309 = vmatpush.msk.msrb.mxu2 %vm374_vm5, %v1556_v22  ;;  %1324 = vmatpush.msk.msrb.mxu3 %vm408_vm6, %v1556_v22 }
  0x77   : > { %1276 = vmatpush.msk.msrb.mxu0 %vm312_vm7, %v1556_v22  ;;  %1292 = vmatpush.msk.msrb.mxu1 %vm344_vm8, %v1556_v22 }
  0x78   : > { %1310 = vmatpush.msk.msrb.mxu2 %vm372_vm9, %v1556_v22  ;;  %1325 = vmatpush.msk.msrb.mxu3 %vm406_vm10, %v1556_v22 }
  0x79   : > { %1277 = vmatpush.msk.msrb.mxu0 %vm310_vm11, %v1556_v22  ;;  %1293 = vmatpush.msk.msrb.mxu1 %vm342_vm12, %v1556_v22 }
  0x7a   : > { %881 = vmatmul.f32.vlgmr.msrb.gmra.mxu2 %v2157_v63  ;;  %1326 = vmatpush.msk.msrb.mxu3 %vm404_vm13, %v1556_v22 }
  0x7b   : > { %1278 = vmatpush.msk.msrb.mxu0 %vm308_vm14, %v1556_v22  ;;  %1294 = vmatpush.msk.msrb.mxu1 %vm340_vm15, %v1556_v22 }
  0x7c   : > { %910 = vmatmul.f32.vlgmr.msrb.gmra.mxu3 %v2160_v57  ;;  %823 = vmatmul.f32.vlgmr.msrb.gmra.mxu0 %v2179_v2 }
  0x7d   : > { %852 = vmatmul.f32.vlgmr.msrb.gmra.mxu1 %v2184_v4 }
  0x82   : > { %884 = vmatmul.f32.gmra.mxu2 %v2211_v3 }
  0x84   : > { %913 = vmatmul.f32.gmra.mxu3 %v2228_v5  ;;  %826 = vmatmul.f32.gmra.mxu0 %v2243_v6 }
  0x85   : > { %855 = vmatmul.f32.gmra.mxu1 %v2248_v7 }
  0x8a   : > { %887 = vmatmul.f32.gmra.mxu2 %v2275_v8 }
  0x8c   : > { %916 = vmatmul.f32.gmra.mxu3 %v2292_v10  ;;  %829 = vmatmul.f32.gmra.mxu0 %v2307_v11 }
  0x8d   : > { %858 = vmatmul.f32.gmra.mxu1 %v2312_v12 }
  0x92   : > { %890 = vmatmul.f32.gmra.mxu2 %v2339_v13 }
  0x94   : > { %919 = vmatmul.f32.gmra.mxu3 %v238_v14  ;;  %832 = vmatmul.f32.gmra.mxu0 %v235_v15 }
  0x95   : > { %861 = vmatmul.f32.gmra.mxu1 %v236_v16 }
  0xd3   : > { %v708_v1 = vpop.f32.mrf.mxu0  ;;  %v737_v22 = vpop.f32.mrf.mxu1 }
  0xd4   : > { %v738_v23 = vadd.f32 %v737_v22, %v708_v1 }
  0xd5   : > { %v766_v24 = vpop.f32.mrf.mxu2 }
  0xd6   : > { %v795_v25 = vpop.f32.mrf.mxu3  ;;  %v767_v26 = vadd.f32 %v766_v24, %v738_v23 }
  0xd8   : > { %v796_v27 = vadd.f32 %v795_v25, %v767_v26 }
  0xda   : > { %923 = vst [vmem:[%s2427_s15] sm:$0xff] %v796_v27 }
  0xdd   : > { %v711_v28 = vpop.f32.mrf.mxu0  ;;  %v740_v29 = vpop.f32.mrf.mxu1 }
  0xde   : > { %v769_v30 = vpop.f32.mrf.mxu2  ;;  %v741_v31 = vadd.f32 %v740_v29, %v711_v28 }
  0xe0   : > { %v770_v32 = vadd.f32 %v769_v30, %v741_v31 }
  0xe1   : > { %v798_v33 = vpop.f32.mrf.mxu3 }
  0xe2   : > { %v799_v34 = vadd.f32 %v798_v33, %v770_v32 }
  0xe4   : > { %925 = vst [vmem:[%s2427_s15 + $0x10] sm:$0xff] %v799_v34 }
  0xe7   : > { %v714_v35 = vpop.f32.mrf.mxu0  ;;  %v743_v36 = vpop.f32.mrf.mxu1 }
  0xe8   : > { %v772_v37 = vpop.f32.mrf.mxu2  ;;  %v744_v38 = vadd.f32 %v743_v36, %v714_v35 }
  0xea   : > { %v773_v39 = vadd.f32 %v772_v37, %v744_v38 }
  0xeb   : > { %v801_v40 = vpop.f32.mrf.mxu3 }
  0xec   : > { %v802_v41 = vadd.f32 %v801_v40, %v773_v39 }
  0xee   : > { %927 = vst [vmem:[%s2427_s15 + $0x20] sm:$0xff] %v802_v41 }
  0xf1   : > { %v717_v42 = vpop.f32.mrf.mxu0  ;;  %v746_v43 = vpop.f32.mrf.mxu1 }
  0xf2   : > { %v775_v44 = vpop.f32.mrf.mxu2  ;;  %v747_v45 = vadd.f32 %v746_v43, %v717_v42 }
  0xf4   : > { %v776_v46 = vadd.f32 %v775_v44, %v747_v45 }
  0xf5   : > { %v804_v47 = vpop.f32.mrf.mxu3 }
  0xf6   : > { %v805_v48 = vadd.f32 %v804_v47, %v776_v46 }
  0xf8   : > { %929 = vst [vmem:[%s2427_s15 + $0x30] sm:$0xff] %v805_v48 }
  0xf9   : > { %v824_v49 = vpop.f32.mrf.mxu0 }
  0xfa   : > { %v853_v50 = vpop.f32.mrf.mxu1 }
  0xfb   : > { %v854_v51 = vadd.f32 %v853_v50, %v824_v49 }
  0xfd   : > { %v882_v52 = vpop.f32.mrf.mxu2 }
  0xfe   : > { %v883_v53 = vadd.f32 %v882_v52, %v854_v51 }
  0xff   : > { %v911_v54 = vpop.f32.mrf.mxu3 }
 0x100   : > { %v912_v55 = vadd.f32 %v911_v54, %v883_v53 }
 0x101   : > { %v827_v56 = vpop.f32.mrf.mxu0 }
 0x102   : > { %924 = vst [vmem:[%s2427_s15 + $0x8] sm:$0xff] %v912_v55  ;;  %v856_v57 = vpop.f32.mrf.mxu1 }
 0x103   : > { %v857_v58 = vadd.f32 %v856_v57, %v827_v56 }
 0x105   : > { %v885_v59 = vpop.f32.mrf.mxu2 }
 0x106   : > { %v886_v60 = vadd.f32 %v885_v59, %v857_v58 }
 0x107   : > { %v914_v61 = vpop.f32.mrf.mxu3 }
 0x108   : > { %v915_v62 = vadd.f32 %v914_v61, %v886_v60 }
 0x109   : > { %v830_v63 = vpop.f32.mrf.mxu0 }
 0x10a   : > { %926 = vst [vmem:[%s2427_s15 + $0x18] sm:$0xff] %v915_v62  ;;  %v859_v0 = vpop.f32.mrf.mxu1 }
 0x10b   : > { %v860_v9 = vadd.f32 %v859_v0, %v830_v63 }
 0x10d   : > { %v888_v2 = vpop.f32.mrf.mxu2 }
 0x10e   : > { %v889_v4 = vadd.f32 %v888_v2, %v860_v9 }
 0x10f   : > { %v917_v3 = vpop.f32.mrf.mxu3 }
 0x110   : > { %v918_v5 = vadd.f32 %v917_v3, %v889_v4 }
 0x111   : > { %v833_v6 = vpop.f32.mrf.mxu0 }
 0x112   : > { %928 = vst [vmem:[%s2427_s15 + $0x28] sm:$0xff] %v918_v5  ;;  %v862_v7 = vpop.f32.mrf.mxu1 }
 0x113   : > { %v863_v8 = vadd.f32 %v862_v7, %v833_v6 }
 0x115   : > { %v891_v10 = vpop.f32.mrf.mxu2 }
 0x116   : > { %v892_v11 = vadd.f32 %v891_v10, %v863_v8 }
 0x117   : > { %v920_v12 = vpop.f32.mrf.mxu3 }
 0x118   : > { %v921_v13 = vadd.f32 %v920_v12, %v892_v11 }
 0x11a   : > { %930 = vst [vmem:[%s2427_s15 + $0x38] sm:$0xff] %v921_v13 }
 0x11b   : > { %1493 = shalt.err (!%p1490_p13)
}
 0x11c   : > { %s1557_s3 = smov 256   ;;  %s1558_s6 = smov 16  }
 0x11d   : > { %1338 = dma.vmem_to_hbm [thread:$0]  (%p1625_p9), %s947_s19, 1024, %s949_s27, %s932_s12, %s1557_s3, %s1557_s3, %s1558_s6  }
 0x11e PF: > { %s963_s8 = sand.u32 1, %s1532_s9   ;;  %p1348_p0 = pnand %p1061_p12, %p1632_p11 }
 0x11f   : > { %s964_s21 = scalar_lea.sflag [#allocation4], %s963_s8 }
 0x120   : > { %p1349_p1 = pneg %p1348_p0 }
 0x122   : > { %1527 = dma.done.wait (%p1349_p1), %s964_s21, 1024  }
 0x123   : > { %1529 = vsyncadd (%p1349_p1), %s964_s21, 4294966272  ;;  %s21_s14 = sadd.s32 1, %s1552_s14   ;;  %s2499_s9 = smov %s1536_s10 }
 0x124   : > { %p18_p2 = scmp.ge.s32.totalorder %s21_s14, 4   ;;  %s2500_s10 = smov %s1540_s11 }
 0x125   : > { %s2501_s11 = smov %s1630_s23  ;;  %s2502_s12 = smov %s1548_s13 }
 0x126   : > { %s2503_s13 = smov %s2505_s17  ;;  %20 = sbr.rel (!%p18_p2) target bundleno = 8 (0x8), region = 86 }
 0x12b   :  { %970 = vsyncpa [#allocation3], 1 }
 0x12c   :  { %972 = vsyncpa [#allocation3 + $0x1], 1 }
 0x12d   :  { %973 = vsyncpa [#allocation6], 1 }
 0x12e   :  { %975 = vsyncpa [#allocation6 + $0x1], 1 }
 0x12f   :  { %976 = vsyncpa [#allocation4], 1 }
 0x130   :  { %978 = vsyncpa [#allocation4 + $0x1], 1 }

</bundles_post_ra>
